<compile_context>
chip_gen: v7x
topology: tpu7x:2x2x1
jax: 0.10.0
libtpu: 0.0.40
codegen_flags: <defaults>
</compile_context>

<pallas_src>
import math

import jax
import jax.numpy as jnp
from jax.experimental import pallas as pl
from jax.experimental.pallas import tpu as pltpu


# ---------------------------------------------------------------------------
# Module hyperparameters (synthetic, small)
# ---------------------------------------------------------------------------
NUM_FACES = 3
NUM_DICE = 2
N_HIDDEN = 32
N_LAYERS = 3                       # fixed at 3 (Net2 default)


def output_size(num_faces, num_dice):
    return num_faces ** num_dice


def input_size(num_faces, num_dice):
    return 1 + 1 + (2 * num_faces * num_dice + 1) + 2 * output_size(num_faces, num_dice)


N_IN = input_size(NUM_FACES, NUM_DICE)      # 33
N_OUT = output_size(NUM_FACES, NUM_DICE)    # 9

# Padded / packed layout constants.
LANE = 128            # lane width of weight columns / hidden activations
IN_LANES = 64         # padded input width (33 -> 64): halves the input stream
OUT_LANES = 16        # padded output width (9 -> 16): 8x smaller f32 writeback
SEG0 = 64             # packed K rows for layer-1 weight (matches IN_LANES)
SEG = 128             # packed K rows for hidden / head weight segments
W_ROWS = SEG0 + 3 * SEG            # 448 rows in the packed weight slab
BIAS_ROWS = 8                      # bias slab sublane-padded to 8 rows

# Static row offsets / lengths of the 4 weight segments inside the slab.
_W_OFF = (0, SEG0, SEG0 + SEG, SEG0 + 2 * SEG)     # 0, 64, 192, 320 (16-aligned)
_W_LEN = (SEG0, SEG, SEG, SEG)

_INV_SQRT2 = 1.0 / math.sqrt(2.0)


# ---------------------------------------------------------------------------
# Pallas kernel: whole forward for one (block_rows, ...) activation tile.
#   x_ref   : (block_rows, 64)  bf16  -- advances with the batch grid
#   w_ref   : (448, 128)        bf16  -- packed [w1;w2;w3;wo], VMEM-resident
#   b_ref   : (8, 128)          f32   -- packed biases, VMEM-resident
#   out_ref : (block_rows, 16)  f32   -- narrow lane-padded output
# ---------------------------------------------------------------------------
def _net2_kernel(x_ref, w_ref, b_ref, out_ref):
    def gelu(v):
        # torch.nn.functional.gelu default ("none") = exact erf formulation (f32)
        return 0.5 * v * (1.0 + jax.lax.erf(v * _INV_SQRT2))

    def layer(h, seg):
        w = w_ref[pl.ds(_W_OFF[seg], _W_LEN[seg]), :]   # bf16, static 16-aligned slice
        b = b_ref[pl.ds(seg, 1), :]                      # f32, (1, 128) broadcast
        return jnp.dot(h.astype(jnp.bfloat16), w,
                       preferred_element_type=jnp.float32) + b

    h = x_ref[...]                      # bf16 activations, 64 lanes
    h = gelu(layer(h, 0))               # body layer 1 (K=64 -> 128 cols, f32)
    h = gelu(layer(h, 1))               # body layer 2
    h = gelu(layer(h, 2))               # body layer 3
    y = layer(h, 3)                     # 0.01-scaled output head (128 cols)
    out_ref[...] = y[:, :OUT_LANES].astype(out_ref.dtype)   # narrow f32 writeback


# ---------------------------------------------------------------------------
# Wrapper: pad batch to a multiple of the effective block, pad features to 64
# lanes, run a 1-D batch grid, then slice back to [B, N_OUT].
# ---------------------------------------------------------------------------
def net2_forward(x, w_slab, b_slab, *, block_rows=1024):
    """x: [B, N_IN] float32 -> [B, N_OUT] float32."""
    B, n_in = x.shape
    assert n_in == N_IN

    # Effective block: large enough to amortize ~0.35us/step overhead, but
    # capped near B/2 so (a) v7x megacore gets >= 2 parallel steps on larger
    # batches and (b) batch-row padding waste stays bounded for small batches.
    half = -(-B // 2)                                # ceil(B/2), python int
    eff = max(8, min(block_rows, ((half + 7) // 8) * 8))
    grid_b = -(-B // eff)                            # ceil div
    b_pad = grid_b * eff

    x_pad = jnp.zeros((b_pad, IN_LANES), jnp.bfloat16)
    x_pad = x_pad.at[:B, :n_in].set(x.astype(jnp.bfloat16))

    out_pad = pl.pallas_call(
        _net2_kernel,
        out_shape=jax.ShapeDtypeStruct((b_pad, OUT_LANES), jnp.float32),
        grid_spec=pltpu.PrefetchScalarGridSpec(
            num_scalar_prefetch=0,
            grid=(grid_b,),
            in_specs=[
                # activation tile advances with the batch grid
                pl.BlockSpec((eff, IN_LANES), lambda i: (i, 0)),
                # packed weights / biases: constant index_map -> fetched once,
                # VMEM-resident across all grid steps (revisit optimization)
                pl.BlockSpec((W_ROWS, LANE), lambda i: (0, 0)),
                pl.BlockSpec((BIAS_ROWS, LANE), lambda i: (0, 0)),
            ],
            out_specs=pl.BlockSpec((eff, OUT_LANES), lambda i: (i, 0)),
        ),
        compiler_params=pltpu.CompilerParams(
            dimension_semantics=("parallel",)),     # megacore sharding on v7x
    )(x_pad, w_slab, b_slab)

    return out_pad[:B, :N_OUT]


# ---------------------------------------------------------------------------
# Parameter init (mimics torch.nn.Linear default U(-k, k), k=1/sqrt(fan_in));
# output layer weight & bias scaled by 0.01, as in Net2.__init__.
# Weights are stored [in_features, out_features] so the kernel does x @ W + b.
# ---------------------------------------------------------------------------
def init_params(key):
    def linear(key, fan_in, fan_out, scale=1.0):
        kw, kb = jax.random.split(key)
        bound = 1.0 / math.sqrt(fan_in)
        w = jax.random.uniform(kw, (fan_in, fan_out), jnp.float32, -bound, bound) * scale
        b = jax.random.uniform(kb, (1, fan_out), jnp.float32, -bound, bound) * scale
        return w, b

    k1, k2, k3, k4 = jax.random.split(key, 4)
    return (
        linear(k1, N_IN, N_HIDDEN),
        linear(k2, N_HIDDEN, N_HIDDEN),
        linear(k3, N_HIDDEN, N_HIDDEN),
        linear(k4, N_HIDDEN, N_OUT, scale=0.01),
    )


def pack_params(params):
    """Pack weights into one bf16 [448,128] slab and biases into f32 [8,128]."""
    def pad_w(w, rows):
        k_in, k_out = w.shape
        seg = jnp.zeros((rows, LANE), jnp.float32)
        return seg.at[:k_in, :k_out].set(w)

    def pad_b(b):
        b = b.reshape(-1)
        row = jnp.zeros((LANE,), jnp.float32)
        return row.at[:b.shape[0]].set(b)

    (w1, b1), (w2, b2), (w3, b3), (wo, bo) = params
    w_slab = jnp.concatenate(
        [pad_w(w1, SEG0), pad_w(w2, SEG), pad_w(w3, SEG), pad_w(wo, SEG)],
        axis=0).astype(jnp.bfloat16)
    b_slab = jnp.zeros((BIAS_ROWS, LANE), jnp.float32)
    b_slab = (b_slab.at[0].set(pad_b(b1)).at[1].set(pad_b(b2))
                     .at[2].set(pad_b(b3)).at[3].set(pad_b(bo)))
    return w_slab, b_slab


# ---------------------------------------------------------------------------
# Pure-JAX reference with the SAME precision recipe as the kernel
# (bf16 MXU operands, f32 accumulation, f32 exact-erf GELU).
# ---------------------------------------------------------------------------
def net2_ref(x, params):
    (w1, b1), (w2, b2), (w3, b3), (wo, bo) = params

    def gelu(v):
        return 0.5 * v * (1.0 + jax.lax.erf(v * _INV_SQRT2))

    def layer(h, w, b):
        return jnp.dot(h.astype(jnp.bfloat16), w.astype(jnp.bfloat16),
                       preferred_element_type=jnp.float32) + b

    h = gelu(layer(x, w1, b1))
    h = gelu(layer(h, w2, b2))
    h = gelu(layer(h, w3, b3))
    return layer(h, wo, bo)


if __name__ == "__main__":
    key = jax.random.PRNGKey(0)
    k_params, k_x1, k_x2, k_x3 = jax.random.split(key, 4)

    params = init_params(k_params)
    w_slab, b_slab = pack_params(params)

    # Small batch: single grid step, tiny effective block (minimal padding).
    x_small = jax.random.normal(k_x1, (8, N_IN), jnp.float32)
    out_small = jax.block_until_ready(net2_forward(x_small, w_slab, b_slab))
    ref_small = net2_ref(x_small, params)
    assert out_small.shape == (8, N_OUT)
    assert jnp.allclose(out_small, ref_small, atol=1e-4, rtol=1e-4), "small-batch mismatch"

    # Non-multiple batch: exercises the 2-step grid (v7x megacore split),
    # batch padding, and the VMEM-resident weight path.
    x_mid = jax.random.normal(k_x2, (260, N_IN), jnp.float32)
    out_mid = jax.block_until_ready(net2_forward(x_mid, w_slab, b_slab))
    ref_mid = net2_ref(x_mid, params)
    assert out_mid.shape == (260, N_OUT)
    assert jnp.allclose(out_mid, ref_mid, atol=1e-4, rtol=1e-4), "mid-batch mismatch"

    # Larger batch: hits the full 1024-row block (multi-step grid), the main
    # throughput configuration after the perf changes.
    x_big = jax.random.normal(k_x3, (2600, N_IN), jnp.float32)
    out_big = jax.block_until_ready(net2_forward(x_big, w_slab, b_slab))
    ref_big = net2_ref(x_big, params)
    assert out_big.shape == (2600, N_OUT)
    assert jnp.allclose(out_big, ref_big, atol=1e-4, rtol=1e-4), "big-batch mismatch"

    print("KERNEL_OK")
</pallas_src>

<mosaic_0001>
module attributes {stable_mosaic.version = 11 : i64} {
  func.func @_net2_kernel(%arg0: i32, %arg1: memref<8x64xbf16, #tpu.memory_space<vmem>>, %arg2: memref<448x128xbf16, #tpu.memory_space<vmem>>, %arg3: memref<8x128xf32, #tpu.memory_space<vmem>>, %arg4: memref<8x16xf32, #tpu.memory_space<vmem>>) attributes {dimension_semantics = [#tpu.dimension_semantics<parallel>], iteration_bounds = array<i64: 1>, scalar_prefetch = 0 : i64, scratch_operands = 0 : i64, tpu.core_type = #tpu.core_type<tc>, window_params = [{transform_indices = @transform_0, window_bounds = array<i64: 8, 64>}, {pipeline_mode = #tpu.pipeline_mode<synchronous>, transform_indices = @transform_1, window_bounds = array<i64: 448, 128>}, {pipeline_mode = #tpu.pipeline_mode<synchronous>, transform_indices = @transform_2, window_bounds = array<i64: 8, 128>}, {transform_indices = @transform_3, window_bounds = array<i64: 8, 16>}]} {
    %c0 = arith.constant 0 : index
    %c0_0 = arith.constant 0 : index
    %0 = vector.load %arg1[%c0, %c0_0] : memref<8x64xbf16, #tpu.memory_space<vmem>>, vector<8x64xbf16>
    %c0_1 = arith.constant 0 : index
    %c0_2 = arith.constant 0 : index
    %1 = vector.load %arg2[%c0_1, %c0_2] : memref<448x128xbf16, #tpu.memory_space<vmem>>, vector<64x128xbf16>
    %c0_3 = arith.constant 0 : index
    %c0_4 = arith.constant 0 : index
    %2 = vector.load %arg3[%c0_3, %c0_4] : memref<8x128xf32, #tpu.memory_space<vmem>>, vector<1x128xf32>
    %cst = arith.constant dense<0.000000e+00> : vector<8x128xf32>
    %3 = tpu.matmul %0, %1, %cst {dimension_numbers = #tpu.dot_dimension_numbers<[1], [0], [0], [1], [0, 0, 1, 1], [], []>} : vector<8x64xbf16>, vector<64x128xbf16>, vector<8x128xf32> -> vector<8x128xf32>
    %4 = vector.broadcast %2 : vector<1x128xf32> to vector<8x128xf32>
    %5 = arith.addf %3, %4 : vector<8x128xf32>
    %cst_5 = arith.constant 5.000000e-01 : f32
    %6 = vector.broadcast %cst_5 : f32 to vector<8x128xf32>
    %7 = arith.mulf %6, %5 : vector<8x128xf32>
    %cst_6 = arith.constant 0.707106769 : f32
    %8 = vector.broadcast %cst_6 : f32 to vector<8x128xf32>
    %9 = arith.mulf %5, %8 : vector<8x128xf32>
    %10 = math.erf %9 : vector<8x128xf32>
    %cst_7 = arith.constant 1.000000e+00 : f32
    %11 = vector.broadcast %cst_7 : f32 to vector<8x128xf32>
    %12 = arith.addf %11, %10 : vector<8x128xf32>
    %13 = arith.mulf %7, %12 : vector<8x128xf32>
    %c64 = arith.constant 64 : index
    %c0_8 = arith.constant 0 : index
    %14 = vector.load %arg2[%c64, %c0_8] : memref<448x128xbf16, #tpu.memory_space<vmem>>, vector<128x128xbf16>
    %c1 = arith.constant 1 : index
    %c0_9 = arith.constant 0 : index
    %15 = vector.load %arg3[%c1, %c0_9] : memref<8x128xf32, #tpu.memory_space<vmem>>, vector<1x128xf32>
    %16 = arith.truncf %13 : vector<8x128xf32> to vector<8x128xbf16>
    %cst_10 = arith.constant dense<0.000000e+00> : vector<8x128xf32>
    %17 = tpu.matmul %16, %14, %cst_10 {dimension_numbers = #tpu.dot_dimension_numbers<[1], [0], [0], [1], [0, 0, 1, 1], [], []>} : vector<8x128xbf16>, vector<128x128xbf16>, vector<8x128xf32> -> vector<8x128xf32>
    %18 = vector.broadcast %15 : vector<1x128xf32> to vector<8x128xf32>
    %19 = arith.addf %17, %18 : vector<8x128xf32>
    %cst_11 = arith.constant 5.000000e-01 : f32
    %20 = vector.broadcast %cst_11 : f32 to vector<8x128xf32>
    %21 = arith.mulf %20, %19 : vector<8x128xf32>
    %cst_12 = arith.constant 0.707106769 : f32
    %22 = vector.broadcast %cst_12 : f32 to vector<8x128xf32>
    %23 = arith.mulf %19, %22 : vector<8x128xf32>
    %24 = math.erf %23 : vector<8x128xf32>
    %cst_13 = arith.constant 1.000000e+00 : f32
    %25 = vector.broadcast %cst_13 : f32 to vector<8x128xf32>
    %26 = arith.addf %25, %24 : vector<8x128xf32>
    %27 = arith.mulf %21, %26 : vector<8x128xf32>
    %c192 = arith.constant 192 : index
    %c0_14 = arith.constant 0 : index
    %28 = vector.load %arg2[%c192, %c0_14] : memref<448x128xbf16, #tpu.memory_space<vmem>>, vector<128x128xbf16>
    %c2 = arith.constant 2 : index
    %c0_15 = arith.constant 0 : index
    %29 = vector.load %arg3[%c2, %c0_15] : memref<8x128xf32, #tpu.memory_space<vmem>>, vector<1x128xf32>
    %30 = arith.truncf %27 : vector<8x128xf32> to vector<8x128xbf16>
    %cst_16 = arith.constant dense<0.000000e+00> : vector<8x128xf32>
    %31 = tpu.matmul %30, %28, %cst_16 {dimension_numbers = #tpu.dot_dimension_numbers<[1], [0], [0], [1], [0, 0, 1, 1], [], []>} : vector<8x128xbf16>, vector<128x128xbf16>, vector<8x128xf32> -> vector<8x128xf32>
    %32 = vector.broadcast %29 : vector<1x128xf32> to vector<8x128xf32>
    %33 = arith.addf %31, %32 : vector<8x128xf32>
    %cst_17 = arith.constant 5.000000e-01 : f32
    %34 = vector.broadcast %cst_17 : f32 to vector<8x128xf32>
    %35 = arith.mulf %34, %33 : vector<8x128xf32>
    %cst_18 = arith.constant 0.707106769 : f32
    %36 = vector.broadcast %cst_18 : f32 to vector<8x128xf32>
    %37 = arith.mulf %33, %36 : vector<8x128xf32>
    %38 = math.erf %37 : vector<8x128xf32>
    %cst_19 = arith.constant 1.000000e+00 : f32
    %39 = vector.broadcast %cst_19 : f32 to vector<8x128xf32>
    %40 = arith.addf %39, %38 : vector<8x128xf32>
    %41 = arith.mulf %35, %40 : vector<8x128xf32>
    %c320 = arith.constant 320 : index
    %c0_20 = arith.constant 0 : index
    %42 = vector.load %arg2[%c320, %c0_20] : memref<448x128xbf16, #tpu.memory_space<vmem>>, vector<128x128xbf16>
    %c3 = arith.constant 3 : index
    %c0_21 = arith.constant 0 : index
    %43 = vector.load %arg3[%c3, %c0_21] : memref<8x128xf32, #tpu.memory_space<vmem>>, vector<1x128xf32>
    %44 = arith.truncf %41 : vector<8x128xf32> to vector<8x128xbf16>
    %cst_22 = arith.constant dense<0.000000e+00> : vector<8x128xf32>
    %45 = tpu.matmul %44, %42, %cst_22 {dimension_numbers = #tpu.dot_dimension_numbers<[1], [0], [0], [1], [0, 0, 1, 1], [], []>} : vector<8x128xbf16>, vector<128x128xbf16>, vector<8x128xf32> -> vector<8x128xf32>
    %46 = vector.broadcast %43 : vector<1x128xf32> to vector<8x128xf32>
    %47 = arith.addf %45, %46 : vector<8x128xf32>
    %48 = vector.extract_strided_slice %47 {offsets = [0, 0], sizes = [8, 16], strides = [1, 1]} : vector<8x128xf32> to vector<8x16xf32>
    %c0_23 = arith.constant 0 : index
    %c0_24 = arith.constant 0 : index
    %49 = vector.load %arg4[%c0_23, %c0_24] : memref<8x16xf32, #tpu.memory_space<vmem>>, vector<8x16xf32>
    tpu.vector_store %arg4[%c0_23, %c0_24], %48 {strides = array<i32>} : memref<8x16xf32, #tpu.memory_space<vmem>>, vector<8x16xf32>,
    return
  }
  func.func @transform_0(%arg0: i32) -> (i32, i32) {
    %c0_i32 = arith.constant 0 : i32
    %c0_i32_0 = arith.constant 0 : i32
    return %arg0, %c0_i32 : i32, i32
  }
  func.func @transform_1(%arg0: i32) -> (i32, i32) {
    %c0_i32 = arith.constant 0 : i32
    %c0_i32_0 = arith.constant 0 : i32
    %c0_i32_1 = arith.constant 0 : i32
    return %c0_i32, %c0_i32_0 : i32, i32
  }
  func.func @transform_2(%arg0: i32) -> (i32, i32) {
    %c0_i32 = arith.constant 0 : i32
    %c0_i32_0 = arith.constant 0 : i32
    %c0_i32_1 = arith.constant 0 : i32
    return %c0_i32, %c0_i32_0 : i32, i32
  }
  func.func @transform_3(%arg0: i32) -> (i32, i32) {
    %c0_i32 = arith.constant 0 : i32
    %c0_i32_0 = arith.constant 0 : i32
    return %arg0, %c0_i32 : i32, i32
  }
}

</mosaic_0001>

<bundles_post_ra>
// kernel: tpu_custom_call.1
= control target key start
LH: loop header
LB: loop body
LE: loop exit
PB: predicated region body
PF: predicated region fallthrough
CT: control target
= control target key end

     0   :  { %8 = vsyncpa [#allocation3], 0  ;;  %s883_s0 = inlined_call_operand.hbm [shape: bf16[8,64], index: 0, kind: input, shape index: {}]   ;;  %s884_s1 = inlined_call_operand.hbm [shape: bf16[448,128], index: 1, kind: input, shape index: {}]   ;;  %s885_s2 = inlined_call_operand.hbm [shape: f32[8,128], index: 2, kind: input, shape index: {}]   ;;  %s886_s3 = inlined_call_operand.hbm [shape: f32[8,16], index: 3, kind: output, shape index: {}]  }
   0x1   :  { %9 = vsyncpa [#allocation6], 0 }
   0x2   :  { %10 = vsyncpa [#allocation4], 0  ;;  %s771_s12 = smov [#allocation5]   ;;  %s677_s16 = scalar_lea.hbm %s884_s1, 3584 }
   0x3   :  { %s26_s13 = sshll.u32 %s771_s12, 4  ;;  %p678_p0 = scmp.ne.s32.totalorder %s884_s1, %s677_s16  ;;  %s27_s13 = int_to_ptr.vmem [resolvable:$true] %s26_s13 }
   0x4   :  { %p681_p1 = scmp.lt.u32.totalorder %s677_s16, %s884_s1 }
   0x6   :  { %p683_p2 = pnand %p681_p1, %p678_p0 }
   0x8   :  { %686 = shalt.err (!%p683_p2)
}
   0x9   :  { %s687_s21 = scalar_lea.vmem %s27_s13, 3584  ;;  %p692_p4 = scmp.lt.s32.totalorder %s27_s13, %s27_s13 }
   0xa   :  { %p688_p3 = scmp.ne.s32.totalorder %s27_s13, %s687_s21  ;;  %p693_p5 = scmp.lt.s32.totalorder %s687_s21, %s687_s21 }
   0xc   :  { %p694_p6 = por %p693_p5, %p692_p4 }
   0xe   :  { %p695_p7 = pnand %p694_p6, %p688_p3 }
  0x10   :  { %698 = shalt.err (!%p695_p7)
}
  0x11   :  { %s772_s22 = smov 64   ;;  %s773_s23 = smov 4  }
  0x12   :  { %32 = dma.hbm_to_vmem [thread:$0]  %s884_s1, 3584, %s27_s13, [#allocation6], %s772_s22, %s772_s22, %s773_s23  }
  0x13   :  { %s774_s26 = smov [#allocation2]   ;;  %s775_s28 = smov [#allocation7]  }
  0x14   :  { %s17_s27 = sshll.u32 %s774_s26, 4  ;;  %s39_s29 = sshll.u32 %s775_s28, 4  ;;  %s18_s27 = int_to_ptr.vmem [resolvable:$true] %s17_s27  ;;  %s40_s29 = int_to_ptr.vmem [resolvable:$true] %s39_s29 }
  0x15   :  { %s699_s5 = scalar_lea.hbm %s883_s0, 64 }
  0x16   :  { %p700_p8 = scmp.ne.s32.totalorder %s883_s0, %s699_s5  ;;  %p703_p9 = scmp.lt.u32.totalorder %s699_s5, %s883_s0 }
  0x18   :  { %p705_p10 = pnand %p703_p9, %p700_p8 }
  0x1a   :  { %708 = shalt.err (!%p705_p10)
}
  0x1b   :  { %s709_s1 = scalar_lea.vmem %s18_s27, 64  ;;  %p714_p12 = scmp.lt.s32.totalorder %s18_s27, %s18_s27 }
  0x1c   :  { %p710_p11 = scmp.ne.s32.totalorder %s18_s27, %s709_s1  ;;  %p715_p13 = scmp.lt.s32.totalorder %s709_s1, %s709_s1 }
  0x1e   :  { %p716_p0 = por %p715_p13, %p714_p12 }
  0x20   :  { %p717_p1 = pnand %p716_p0, %p710_p11 }
  0x22   :  { %720 = shalt.err (!%p717_p1)
}
  0x23   :  { %20 = dma.hbm_to_vmem [thread:$0]  %s883_s0, 64, %s18_s27, [#allocation3]  }
  0x24   :  { %s721_s14 = scalar_lea.hbm %s885_s2, 128 }
  0x25   :  { %p722_p2 = scmp.ne.s32.totalorder %s885_s2, %s721_s14  ;;  %p725_p3 = scmp.lt.u32.totalorder %s721_s14, %s885_s2 }
  0x27   :  { %p727_p4 = pnand %p725_p3, %p722_p2 }
  0x29   :  { %730 = shalt.err (!%p727_p4)
}
  0x2a   :  { %s731_s19 = scalar_lea.vmem %s40_s29, 128  ;;  %p736_p6 = scmp.lt.s32.totalorder %s40_s29, %s40_s29 }
  0x2b   :  { %p732_p5 = scmp.ne.s32.totalorder %s40_s29, %s731_s19  ;;  %p737_p7 = scmp.lt.s32.totalorder %s731_s19, %s731_s19 }
  0x2d   :  { %p738_p8 = por %p737_p7, %p736_p6 }
  0x2f   :  { %p739_p9 = pnand %p738_p8, %p732_p5 }
  0x31   :  { %742 = shalt.err (!%p739_p9)
}
  0x32   :  { %42 = dma.hbm_to_vmem [thread:$0]  %s885_s2, 128, %s40_s29, [#allocation6]  }
  0x33   :  { %765 = dma.done.wait [#allocation3], 64  }
  0x34   :  { %766 = vsyncadd [#allocation3], 4294967232 }
  0x35   :  { %767 = dma.done.wait [#allocation6], 3712  }
  0x36   :  { %768 = vsyncadd [#allocation6], 4294963584  ;;  %v776_v0 = vmov 0.0   ;;  %vm777_vm0 = vmmov 0   ;;  %v643_v1 = vld [vmem:[#allocation5] sm:$0xff]   ;;  %v644_v2 = vld [vmem:[#allocation5 + $0x8] sm:$0xff]  }
  0x37   :  { %563 = vmatprep.subr.bf16.mxu0 %v776_v0  ;;  %571 = vmatprep.mubr.msk.bf16.mxu0 %vm777_vm0, %v776_v0  ;;  %v647_v3 = vld [vmem:[#allocation5 + $0x20] sm:$0xff]   ;;  %v645_v4 = vld [vmem:[#allocation5 + $0x10] sm:$0xff]   ;;  %vm91_vm1 = vcmask 523264   ;;  %v648_v5 = vld [vmem:[#allocation5 + $0x28] sm:$0xff]   ;;  %s778_s2 = smov [#allocation8]   ;;  %vm480_vm2 = vcmask 130048  }
  0x38   :  { %575 = vmatprep.subr.bf16.mxu1 %v776_v0  ;;  %591 = vmatprep.mubr.msk.bf16.mxu1 %vm777_vm0, %v776_v0  ;;  %v646_v6 = vld [vmem:[#allocation5 + $0x18] sm:$0xff]   ;;  %v649_v7 = vld [vmem:[#allocation5 + $0x30] sm:$0xff]   ;;  %v651_v10 = vld [vmem:[#allocation5 + $0x40] sm:$0xff]   ;;  %s488_s21 = sshll.u32 %s778_s2, 4  ;;  %s489_s21 = int_to_ptr.vmem [resolvable:$true] %s488_s21 }
  0x39   :  { %564 = vmatpush3.bf16.msra.mxu0 %v643_v1  ;;  %576 = vmatpush3.bf16.msra.mxu1 %v647_v3  ;;  %v53_v8 = vld [vmem:[#allocation2] sm:$0xf]  ;;  %v652_v11 = vld [vmem:[#allocation5 + $0x48] sm:$0xff]   ;;  %v653_v12 = vld [vmem:[#allocation5 + $0x50] sm:$0xff]   ;;  %s743_s22 = scalar_lea.vmem %s489_s21, 128  ;;  %p748_p11 = scmp.lt.s32.totalorder %s489_s21, %s489_s21 }
  0x3a   :  { %565 = vmatprep.subr.bf16.mxu0 %v776_v0  ;;  %577 = vmatprep.subr.bf16.mxu1 %v776_v0  ;;  %v650_v9 = vld [vmem:[#allocation5 + $0x38] sm:$0xff]   ;;  %v655_v14 = vld [vmem:[#allocation5 + $0x60] sm:$0xff]   ;;  %v656_v15 = vld [vmem:[#allocation5 + $0x68] sm:$0xff]   ;;  %p744_p10 = scmp.ne.s32.totalorder %s489_s21, %s743_s22  ;;  %p749_p12 = scmp.lt.s32.totalorder %s743_s22, %s743_s22 }
  0x3b   :  { %v654_v13 = vld [vmem:[#allocation5 + $0x58] sm:$0xff]   ;;  %v657_v16 = vld [vmem:[#allocation5 + $0x70] sm:$0xff]   ;;  %v498_v17 = vld [vmem:[#allocation7] ss:$0 sm:$0xff] }
  0x3c   :  { %v658_v29 = vld [vmem:[#allocation5 + $0x78] sm:$0xff]   ;;  %v659_v30 = vld [vmem:[#allocation5 + $0x80] sm:$0xff]   ;;  %v660_v31 = vld [vmem:[#allocation5 + $0x88] sm:$0xff]   ;;  %p750_p13 = por %p749_p12, %p748_p11 }
  0x3d   :  { %566 = vmatpush3.bf16.msra.mxu0 %v644_v2  ;;  %578 = vmatpush3.bf16.msra.mxu1 %v648_v5  ;;  %v661_v32 = vld [vmem:[#allocation5 + $0x90] sm:$0xff]   ;;  %v662_v33 = vld [vmem:[#allocation5 + $0x98] sm:$0xff]   ;;  %v663_v34 = vld [vmem:[#allocation5 + $0xa0] sm:$0xff]  }
  0x3e   :  { %567 = vmatprep.subr.bf16.mxu0 %v776_v0  ;;  %579 = vmatprep.subr.bf16.mxu1 %v776_v0  ;;  %v664_v35 = vld [vmem:[#allocation5 + $0xa8] sm:$0xff]   ;;  %v665_v36 = vld [vmem:[#allocation5 + $0xb0] sm:$0xff]   ;;  %v504_v37 = vld [vmem:[#allocation7 + $0x1] ss:$0 sm:$0xff]  ;;  %p751_p0 = pnand %p750_p13, %p744_p10 }
  0x3f   :  { %v666_v49 = vld [vmem:[#allocation5 + $0xb8] sm:$0xff]   ;;  %v667_v50 = vld [vmem:[#allocation5 + $0xc0] sm:$0xff]   ;;  %v668_v51 = vld [vmem:[#allocation5 + $0xc8] sm:$0xff]  }
  0x40   :  { %v669_v52 = vld [vmem:[#allocation5 + $0xd0] sm:$0xff]   ;;  %v670_v53 = vld [vmem:[#allocation5 + $0xd8] sm:$0xff]   ;;  %v513_v54 = vld [vmem:[#allocation7 + $0x2] ss:$0 sm:$0xff] }
  0x41   :  { %568 = vmatpush3.bf16.msra.mxu0 %v645_v4  ;;  %580 = vmatpush3.bf16.msra.mxu1 %v649_v7  ;;  %v522_v3 = vld [vmem:[#allocation7 + $0x3] ss:$0 sm:$0xff] }
  0x42   :  { %569 = vmatprep.subr.bf16.mxu0 %v776_v0  ;;  %581 = vmatprep.subr.bf16.mxu1 %v776_v0 }
  0x45   :  { %570 = vmatpush3.bf16.msra.mxu0 %v646_v6  ;;  %582 = vmatpush3.bf16.msra.mxu1 %v650_v9 }
  0x46   :  { %595 = vmatprep.subr.bf16.mxu0 %v776_v0  ;;  %583 = vmatprep.subr.bf16.mxu1 %v776_v0 }
  0x48   :  { %572 = vmatmul.mubr.msk.bf16.vlgmr.msra.gmra.mrb[0].mxu0 %vm91_vm1, %v53_v8 }
  0x49   :  { %611 = vmatprep.mubr.msk.bf16.mxu0 %vm777_vm0, %v776_v0  ;;  %584 = vmatpush3.bf16.msra.mxu1 %v651_v10 }
  0x4a   :  { %585 = vmatprep.subr.bf16.mxu1 %v776_v0  ;;  %596 = vmatpush3.bf16.msra.mxu0 %v655_v14 }
  0x4b   :  { %597 = vmatprep.subr.bf16.mxu0 %v776_v0 }
  0x4d   :  { %586 = vmatpush3.bf16.msra.mxu1 %v652_v11 }
  0x4e   :  { %587 = vmatprep.subr.bf16.mxu1 %v776_v0  ;;  %598 = vmatpush3.bf16.msra.mxu0 %v656_v15 }
  0x4f   :  { %599 = vmatprep.subr.bf16.mxu0 %v776_v0 }
  0x51   :  { %588 = vmatpush3.bf16.msra.mxu1 %v653_v12 }
  0x52   :  { %589 = vmatprep.subr.bf16.mxu1 %v776_v0  ;;  %600 = vmatpush3.bf16.msra.mxu0 %v657_v16 }
  0x53   :  { %601 = vmatprep.subr.bf16.mxu0 %v776_v0 }
  0x55   :  { %590 = vmatpush3.bf16.msra.mxu1 %v654_v13 }
  0x56   :  { %615 = vmatprep.subr.bf16.mxu1 %v776_v0  ;;  %602 = vmatpush3.bf16.msra.mxu0 %v658_v29 }
  0x57   :  { %603 = vmatprep.subr.bf16.mxu0 %v776_v0 }
  0x5a   :  { %604 = vmatpush3.bf16.msra.mxu0 %v659_v30 }
  0x5b   :  { %605 = vmatprep.subr.bf16.mxu0 %v776_v0 }
  0x5e   :  { %606 = vmatpush3.bf16.msra.mxu0 %v660_v31 }
  0x5f   :  { %607 = vmatprep.subr.bf16.mxu0 %v776_v0 }
  0x62   :  { %608 = vmatpush3.bf16.msra.mxu0 %v661_v32 }
  0x63   :  { %609 = vmatprep.subr.bf16.mxu0 %v776_v0 }
  0x66   :  { %610 = vmatpush3.bf16.msra.mxu0 %v662_v33 }
 0x11b   :  { %v129_v18 = vpop.f32.mrb[0].mxu0 }
 0x11c   :  { %v130_v19 = vadd.f32 %v498_v17, %v129_v18  ;;  %v573_v20 = vpop.f32.mrb[1].mxu0 }
 0x11d   :  { %v132_v21 = vpop.f32.mrb[2].mxu0 }
 0x11e   :  { %v136_v22 = vmul.f32 0.70710677, %v130_v19  ;;  %v574_v23 = vpop.f32.mrb[3].mxu0  ;;  %v135_v25 = vmul.f32 0.5, %v130_v19 }
 0x120   :  { %671 = verf.f32 %v136_v22 }
 0x12a   :  { %v672_v24 = vpop.eup %671 }
 0x12b   :  { %v138_v26 = vadd.f32 1.0, %v672_v24 }
 0x12d   :  { %v139_v27 = vmul.f32 %v138_v26, %v135_v25 }
 0x12f   :  { %v157_v28 = vpack.c.bf16 %v139_v27, %v139_v27 }
 0x131   :  { %592 = vmatmul.mubr.bf16.vlgmr.msra.gmra.mrb[0].mxu1 %v157_v28 }
 0x132   :  { %631 = vmatprep.mubr.msk.bf16.mxu1 %vm777_vm0, %v776_v0  ;;  %616 = vmatpush3.bf16.msra.mxu1 %v663_v34 }
 0x133   :  { %617 = vmatprep.subr.bf16.mxu1 %v776_v0 }
 0x136   :  { %618 = vmatpush3.bf16.msra.mxu1 %v664_v35 }
 0x137   :  { %619 = vmatprep.subr.bf16.mxu1 %v776_v0 }
 0x13a   :  { %620 = vmatpush3.bf16.msra.mxu1 %v665_v36 }
 0x13b   :  { %621 = vmatprep.subr.bf16.mxu1 %v776_v0 }
 0x13e   :  { %622 = vmatpush3.bf16.msra.mxu1 %v666_v49 }
 0x13f   :  { %623 = vmatprep.subr.bf16.mxu1 %v776_v0 }
 0x142   :  { %624 = vmatpush3.bf16.msra.mxu1 %v667_v50 }
 0x143   :  { %625 = vmatprep.subr.bf16.mxu1 %v776_v0 }
 0x146   :  { %626 = vmatpush3.bf16.msra.mxu1 %v668_v51 }
 0x147   :  { %627 = vmatprep.subr.bf16.mxu1 %v776_v0 }
 0x14a   :  { %628 = vmatpush3.bf16.msra.mxu1 %v669_v52 }
 0x14b   :  { %629 = vmatprep.subr.bf16.mxu1 %v776_v0 }
 0x14e   :  { %630 = vmatpush3.bf16.msra.mxu1 %v670_v53 }
 0x204   :  { %v244_v38 = vpop.f32.mrb[0].mxu1 }
 0x205   :  { %v245_v39 = vadd.f32 %v504_v37, %v244_v38  ;;  %v593_v40 = vpop.f32.mrb[1].mxu1 }
 0x206   :  { %v247_v41 = vpop.f32.mrb[2].mxu1 }
 0x207   :  { %v251_v42 = vmul.f32 0.70710677, %v245_v39  ;;  %v594_v43 = vpop.f32.mrb[3].mxu1  ;;  %v250_v45 = vmul.f32 0.5, %v245_v39 }
 0x209   :  { %673 = verf.f32 %v251_v42 }
 0x213   :  { %v674_v44 = vpop.eup %673 }
 0x214   :  { %v253_v46 = vadd.f32 1.0, %v674_v44 }
 0x216   :  { %v254_v47 = vmul.f32 %v253_v46, %v250_v45 }
 0x218   :  { %v272_v48 = vpack.c.bf16 %v254_v47, %v254_v47 }
 0x21a   :  { %612 = vmatmul.mubr.bf16.vlgmr.msra.gmra.mrb[4].mxu0 %v272_v48 }
 0x2ed   :  { %v359_v55 = vpop.f32.mrb[4].mxu0 }
 0x2ee   :  { %v360_v56 = vadd.f32 %v513_v54, %v359_v55  ;;  %v613_v57 = vpop.f32.mrb[5].mxu0 }
 0x2ef   :  { %v362_v58 = vpop.f32.mrb[6].mxu0 }
 0x2f0   :  { %v366_v59 = vmul.f32 0.70710677, %v360_v56  ;;  %v614_v60 = vpop.f32.mrb[7].mxu0  ;;  %v365_v62 = vmul.f32 0.5, %v360_v56 }
 0x2f2   :  { %675 = verf.f32 %v366_v59 }
 0x2fc   :  { %v676_v61 = vpop.eup %675 }
 0x2fd   :  { %v368_v63 = vadd.f32 1.0, %v676_v61 }
 0x2ff   :  { %v369_v1 = vmul.f32 %v368_v63, %v365_v62 }
 0x301   :  { %v387_v2 = vpack.c.bf16 %v369_v1, %v369_v1 }
 0x303   :  { %632 = vmatmul.mubr.bf16.vlgmr.msra.gmra.mrb[4].mxu1 %v387_v2 }
 0x3d6   :  { %v474_v0 = vpop.f32.mrb[4].mxu1 }
 0x3d7   :  { %v475_v4 = vadd.f32 %v522_v3, %v474_v0  ;;  %v633_v5 = vpop.f32.mrb[5].mxu1 }
 0x3d8   :  { %v477_v6 = vpop.f32.mrb[6].mxu1 }
 0x3d9   :  { %v634_v7 = vpop.f32.mrb[7].mxu1  ;;  %481 = vst.msk [vmem:[#allocation8] sm:$0xff] %vm480_vm2, %v475_v4 }
 0x3da   :  { %754 = shalt.err (!%p751_p0)
}
 0x3db   :  { %s755_s25 = scalar_lea.hbm %s886_s3, 128 }
 0x3dc   :  { %p756_p1 = scmp.ne.s32.totalorder %s886_s3, %s755_s25  ;;  %p759_p2 = scmp.lt.u32.totalorder %s755_s25, %s886_s3 }
 0x3de   :  { %p761_p3 = pnand %p759_p2, %p756_p1 }
 0x3e0   :  { %764 = shalt.err (!%p761_p3)
}
 0x3e1   :  { %491 = dma.vmem_to_hbm [thread:$0]  %s489_s21, 128, %s886_s3, [#allocation4]  }
 0x3e2   :  { %769 = dma.done.wait [#allocation4], 128  }
 0x3e3   :  { %770 = vsyncadd [#allocation4], 4294967168 }
 0x3e4   :  { %495 = vsyncpa [#allocation3], 1 }
 0x3e5   :  { %496 = vsyncpa [#allocation6], 1 }
 0x3e6   :  { %497 = vsyncpa [#allocation4], 1 }

</bundles_post_ra>
